<compile_context>
chip_gen: v6e
topology: v6e:2x2x1
jax: 0.10.0
libtpu: 0.0.40
codegen_flags: <defaults>
</compile_context>

<pallas_src>
import jax
import jax.numpy as jnp
from jax.experimental import pallas as pl
from jax.experimental.pallas import tpu as pltpu

BN_EPS = 1e-5


def _stats_kernel(x_ref, w_ref, sum_ref, ssq_ref):
    """Per-(sample, HW-tile) partial BN statistics of the fused conv output."""
    xr = jnp.maximum(x_ref[...], 0.0)                                   # (2*C_in, TM)
    y = jnp.dot(w_ref[...], xr, preferred_element_type=jnp.float32)     # (C_out, TM)
    sum_ref[...] = jnp.sum(y, axis=1, keepdims=True)                    # (C_out, 1)
    ssq_ref[...] = jnp.sum(y * y, axis=1, keepdims=True)                # (C_out, 1)


def _apply_kernel(x_ref, w_ref, scale_ref, shift_ref, out_ref):
    """Recompute the fused ReLU + block-diagonal 1x1 convs, apply folded BN affine."""
    xr = jnp.maximum(x_ref[...], 0.0)                                   # (2*C_in, TM)
    y = jnp.dot(w_ref[...], xr, preferred_element_type=jnp.float32)     # (C_out, TM)
    out_ref[...] = y * scale_ref[...] + shift_ref[...]


def _vmem_limit_bytes():
    """Generation-aware scoped-VMEM limit (leave headroom below physical VMEM)."""
    phys = 64 * 1024 * 1024
    try:
        info = pltpu.get_tpu_info()
        phys = int(getattr(info, "vmem_capacity_bytes", phys)) or phys
    except Exception:
        pass
    return min(phys // 2, 64 * 1024 * 1024)


def _pick_tile(hw, c_in2, c_out, budget_bytes):
    """Largest lane tile TM (multiple of 128) whose double-buffered tiles fit the budget."""
    bytes_per_col = 4 * (c_in2 + c_out)              # f32 x column + out column
    tm = (budget_bytes // (2 * bytes_per_col)) // 128 * 128
    tm = max(128, tm)
    hw128 = pl.cdiv(hw, 128) * 128
    return min(tm, hw128)


def factorized_reduce(x, w0, w1, gamma, beta, stride):
    """x: (N, C_in, H, W) f32 NCHW. w0: (C0, C_in), w1: (C1, C_in). -> (N, C_out, Ho, Wo)."""
    n, c_in, h, w = x.shape
    c0, c1 = w0.shape[0], w1.shape[0]
    c_out = c0 + c1
    ho = (h - 1) // stride + 1
    wo = (w - 1) // stride + 1
    hw = ho * wo
    m = n * hw                                       # true BN population size per channel

    # Branch 0: strided subsample.  Branch 1: shift by (+1,+1) with zero fill, then
    # subsample.  ReLU commutes with zero pad/shift (relu(0)==0), so it is applied
    # inside the kernel.
    # TODO(synk): the strided/shifted views are materialized by XLA; an in-kernel
    # strided DMA gather from the original NCHW tensor would avoid this extra copy.
    x0 = x[:, :, ::stride, ::stride]
    x1 = jnp.pad(x, ((0, 0), (0, 0), (0, 1), (0, 1)))[:, :, 1:, 1:][:, :, ::stride, ::stride]

    # Native (N, 2*C_in, Ho*Wo) layout: channel concat + reshape only, no transpose
    # on input, no transpose on the output side either.
    x_cat = jnp.concatenate([x0, x1], axis=1).reshape(n, 2 * c_in, hw).astype(jnp.float32)
    # TODO(synk): x_cat / the output could be bf16 to halve HBM traffic if BN numerics
    # tolerate it (MXU accumulation is already f32 via preferred_element_type).

    # Block-diagonal weight: a single matmul yields the channel-concatenated output.
    w_cat = jnp.zeros((c_out, 2 * c_in), jnp.float32)
    w_cat = w_cat.at[:c0, :c_in].set(w0.astype(jnp.float32))
    w_cat = w_cat.at[c0:, c_in:].set(w1.astype(jnp.float32))

    vmem_limit = _vmem_limit_bytes()
    tm = _pick_tile(hw, 2 * c_in, c_out, budget_bytes=vmem_limit // 2)
    hw_pad = pl.cdiv(hw, tm) * tm
    nt = hw_pad // tm
    if hw_pad > hw:
        # Zero columns: relu -> 0, matmul -> 0, so they add nothing to the BN sums,
        # and they are sliced off the output below.
        x_cat = jnp.pad(x_cat, ((0, 0), (0, 0), (0, hw_pad - hw)))

    cparams = pltpu.CompilerParams(
        # No shared scratch between grid points -> fully parallel; lets v7x shard the
        # grid across both TensorCores (no effect on single-TC v5e/v6e).
        dimension_semantics=("parallel", "parallel"),
        vmem_limit_bytes=vmem_limit,
    )

    x_spec = pl.BlockSpec((None, 2 * c_in, tm), lambda b, t: (b, 0, t))   # squeezed batch dim
    w_spec = pl.BlockSpec((c_out, 2 * c_in), lambda b, t: (0, 0))         # resident weight

    # ---- Pass 1: per-tile partial BN statistics (tiny outputs, no shared scratch). ----
    psum, pssq = pl.pallas_call(
        _stats_kernel,
        out_shape=(jax.ShapeDtypeStruct((n, nt, c_out, 1), jnp.float32),
                   jax.ShapeDtypeStruct((n, nt, c_out, 1), jnp.float32)),
        grid_spec=pltpu.PrefetchScalarGridSpec(
            num_scalar_prefetch=0,
            grid=(n, nt),
            in_specs=[x_spec, w_spec],
            out_specs=[
                pl.BlockSpec((None, None, c_out, 1), lambda b, t: (b, t, 0, 0)),
                pl.BlockSpec((None, None, c_out, 1), lambda b, t: (b, t, 0, 0)),
            ],
        ),
        compiler_params=cparams,
        cost_estimate=pl.CostEstimate(
            flops=2 * n * hw_pad * (2 * c_in) * c_out,
            transcendentals=0,
            bytes_accessed=4 * (2 * c_in * n * hw_pad + 2 * n * nt * c_out),
        ),
    )(x_cat, w_cat)

    # Fold global BN stats into one per-channel scale/shift (tiny XLA ops).
    # NOTE: var = E[y^2] - E[y]^2 in f32 with a clamp; the per-tile partial sums keep
    # the reduction reasonably conditioned for realistic M.
    sums = jnp.sum(psum, axis=(0, 1)).reshape(c_out)
    ssqs = jnp.sum(pssq, axis=(0, 1)).reshape(c_out)
    mean = sums / m
    var = jnp.maximum(ssqs / m - mean * mean, 0.0)                       # biased variance
    scale = gamma.astype(jnp.float32) * jax.lax.rsqrt(var + BN_EPS)
    shift = beta.astype(jnp.float32) - mean * scale

    # ---- Pass 2: recompute fused matmul per tile and apply the folded affine. ----
    # TODO(synk): for deployments with C_out < 2*C_in, write un-normalized y in pass 1
    # and re-read it here via input_output_aliases instead of re-reading x_cat.
    out_pad = pl.pallas_call(
        _apply_kernel,
        out_shape=jax.ShapeDtypeStruct((n, c_out, hw_pad), jnp.float32),
        grid_spec=pltpu.PrefetchScalarGridSpec(
            num_scalar_prefetch=0,
            grid=(n, nt),
            in_specs=[
                x_spec,
                w_spec,
                pl.BlockSpec((c_out, 1), lambda b, t: (0, 0)),            # scale
                pl.BlockSpec((c_out, 1), lambda b, t: (0, 0)),            # shift
            ],
            out_specs=pl.BlockSpec((None, c_out, tm), lambda b, t: (b, 0, t)),
        ),
        compiler_params=cparams,
        cost_estimate=pl.CostEstimate(
            flops=2 * n * hw_pad * (2 * c_in) * c_out,
            transcendentals=0,
            bytes_accessed=4 * ((2 * c_in + c_out) * n * hw_pad + c_out * (2 * c_in + 2)),
        ),
    )(x_cat, w_cat, scale.reshape(c_out, 1), shift.reshape(c_out, 1))

    out = out_pad[:, :, :hw]                                             # (N, C_out, Ho*Wo)
    return out.reshape(n, c_out, ho, wo)                                 # pure reshape, no transpose


def _reference(x, w0, w1, gamma, beta, stride):
    """Pure-JAX reference matching the PyTorch forward (training-mode BN)."""
    xr = jnp.maximum(x, 0.0)
    x_shift = jnp.pad(xr, ((0, 0), (0, 0), (0, 1), (0, 1)))[:, :, 1:, 1:]
    b0 = jnp.einsum('oc,nchw->nohw', w0, xr[:, :, ::stride, ::stride])
    b1 = jnp.einsum('oc,nchw->nohw', w1, x_shift[:, :, ::stride, ::stride])
    y = jnp.concatenate([b0, b1], axis=1)
    mean = jnp.mean(y, axis=(0, 2, 3), keepdims=True)
    var = jnp.mean((y - mean) ** 2, axis=(0, 2, 3), keepdims=True)
    y_hat = (y - mean) / jnp.sqrt(var + BN_EPS)
    return y_hat * gamma.reshape(1, -1, 1, 1) + beta.reshape(1, -1, 1, 1)


if __name__ == "__main__":
    # FactorizedReduce(C_in=4, C_out=8, stride=2, affine=True, track_running_stats=True)
    N, C_in, H, W = 2, 4, 16, 16
    C_out, stride = 8, 2
    C0 = C_out // 2
    C1 = C_out - C0

    key = jax.random.PRNGKey(0)
    kx, k0, k1 = jax.random.split(key, 3)
    x = jax.random.normal(kx, (N, C_in, H, W), dtype=jnp.float32)

    # Conv2d weights squeezed from (Co, Ci, 1, 1) -> (Co, Ci).
    w0 = jax.random.normal(k0, (C0, C_in), dtype=jnp.float32) * 0.1
    w1 = jax.random.normal(k1, (C1, C_in), dtype=jnp.float32) * 0.1
    # BatchNorm2d affine params at PyTorch init values (weight=1, bias=0).
    gamma = jnp.ones((C_out,), dtype=jnp.float32)
    beta = jnp.zeros((C_out,), dtype=jnp.float32)

    out = factorized_reduce(x, w0, w1, gamma, beta, stride)
    out = jax.block_until_ready(out)

    ref = _reference(x, w0, w1, gamma, beta, stride)
    assert out.shape == (N, C_out, (H - 1) // stride + 1, (W - 1) // stride + 1)
    assert jnp.allclose(out, ref, atol=1e-4, rtol=1e-4)

    print("KERNEL_OK")
</pallas_src>

<mosaic_0001>
module attributes {stable_mosaic.version = 11 : i64} {
  func.func @_stats_kernel(%arg0: i32, %arg1: i32, %arg2: memref<1x8x128xf32, #tpu.memory_space<vmem>>, %arg3: memref<8x8xf32, #tpu.memory_space<vmem>>, %arg4: memref<1x1x8x1xf32, #tpu.memory_space<vmem>>, %arg5: memref<1x1x8x1xf32, #tpu.memory_space<vmem>>) attributes {dimension_semantics = [#tpu.dimension_semantics<parallel>, #tpu.dimension_semantics<parallel>], iteration_bounds = array<i64: 2, 1>, scalar_prefetch = 0 : i64, scratch_operands = 0 : i64, tpu.core_type = #tpu.core_type<tc>, window_params = [{transform_indices = @transform_0, window_bounds = array<i64: 1, 8, 128>}, {pipeline_mode = #tpu.pipeline_mode<synchronous>, transform_indices = @transform_1, window_bounds = array<i64: 8, 8>}, {transform_indices = @transform_2, window_bounds = array<i64: 1, 1, 8, 1>}, {transform_indices = @transform_3, window_bounds = array<i64: 1, 1, 8, 1>}]} {
    %c0 = arith.constant 0 : index
    %c0_0 = arith.constant 0 : index
    %c0_1 = arith.constant 0 : index
    %0 = vector.load %arg2[%c0, %c0_0, %c0_1] : memref<1x8x128xf32, #tpu.memory_space<vmem>>, vector<1x8x128xf32>
    %1 = vector.shape_cast %0 : vector<1x8x128xf32> to vector<8x128xf32>
    %cst = arith.constant 0.000000e+00 : f32
    %2 = vector.broadcast %cst : f32 to vector<8x128xf32>
    %3 = arith.maximumf %1, %2 : vector<8x128xf32>
    %c0_2 = arith.constant 0 : index
    %c0_3 = arith.constant 0 : index
    %4 = vector.load %arg3[%c0_2, %c0_3] : memref<8x8xf32, #tpu.memory_space<vmem>>, vector<8x8xf32>
    %cst_4 = arith.constant dense<0.000000e+00> : vector<8x128xf32>
    %5 = tpu.matmul %4, %3, %cst_4 {dimension_numbers = #tpu.dot_dimension_numbers<[1], [0], [0], [1], [0, 0, 1, 1], [], []>} : vector<8x8xf32>, vector<8x128xf32>, vector<8x128xf32> -> vector<8x128xf32>
    %cst_5 = arith.constant dense<0.000000e+00> : vector<8xf32>
    %6 = vector.multi_reduction <add>, %5, %cst_5 [1] : vector<8x128xf32> to vector<8xf32>
    %7 = vector.shape_cast %6 : vector<8xf32> to vector<8x1xf32>
    %c0_6 = arith.constant 0 : index
    %c0_7 = arith.constant 0 : index
    %c0_8 = arith.constant 0 : index
    %c0_9 = arith.constant 0 : index
    %8 = vector.load %arg4[%c0_6, %c0_7, %c0_8, %c0_9] : memref<1x1x8x1xf32, #tpu.memory_space<vmem>>, vector<1x1x8x1xf32>
    %9 = vector.shape_cast %8 : vector<1x1x8x1xf32> to vector<8x1xf32>
    %10 = vector.shape_cast %7 : vector<8x1xf32> to vector<1x1x8x1xf32>
    tpu.vector_store %arg4[%c0_6, %c0_7, %c0_8, %c0_9], %10 {strides = array<i32>} : memref<1x1x8x1xf32, #tpu.memory_space<vmem>>, vector<1x1x8x1xf32>,
    %11 = arith.mulf %5, %5 : vector<8x128xf32>
    %cst_10 = arith.constant dense<0.000000e+00> : vector<8xf32>
    %12 = vector.multi_reduction <add>, %11, %cst_10 [1] : vector<8x128xf32> to vector<8xf32>
    %13 = vector.shape_cast %12 : vector<8xf32> to vector<8x1xf32>
    %c0_11 = arith.constant 0 : index
    %c0_12 = arith.constant 0 : index
    %c0_13 = arith.constant 0 : index
    %c0_14 = arith.constant 0 : index
    %14 = vector.load %arg5[%c0_11, %c0_12, %c0_13, %c0_14] : memref<1x1x8x1xf32, #tpu.memory_space<vmem>>, vector<1x1x8x1xf32>
    %15 = vector.shape_cast %14 : vector<1x1x8x1xf32> to vector<8x1xf32>
    %16 = vector.shape_cast %13 : vector<8x1xf32> to vector<1x1x8x1xf32>
    tpu.vector_store %arg5[%c0_11, %c0_12, %c0_13, %c0_14], %16 {strides = array<i32>} : memref<1x1x8x1xf32, #tpu.memory_space<vmem>>, vector<1x1x8x1xf32>,
    return
  }
  func.func @transform_0(%arg0: i32, %arg1: i32) -> (i32, i32, i32) {
    %c0_i32 = arith.constant 0 : i32
    %c0_i32_0 = arith.constant 0 : i32
    return %arg0, %c0_i32, %arg1 : i32, i32, i32
  }
  func.func @transform_1(%arg0: i32, %arg1: i32) -> (i32, i32) {
    %c0_i32 = arith.constant 0 : i32
    %c0_i32_0 = arith.constant 0 : i32
    %c0_i32_1 = arith.constant 0 : i32
    return %c0_i32, %c0_i32_0 : i32, i32
  }
  func.func @transform_2(%arg0: i32, %arg1: i32) -> (i32, i32, i32, i32) {
    %c0_i32 = arith.constant 0 : i32
    %c0_i32_0 = arith.constant 0 : i32
    %c0_i32_1 = arith.constant 0 : i32
    return %arg0, %arg1, %c0_i32, %c0_i32_0 : i32, i32, i32, i32
  }
  func.func @transform_3(%arg0: i32, %arg1: i32) -> (i32, i32, i32, i32) {
    %c0_i32 = arith.constant 0 : i32
    %c0_i32_0 = arith.constant 0 : i32
    %c0_i32_1 = arith.constant 0 : i32
    return %arg0, %arg1, %c0_i32, %c0_i32_0 : i32, i32, i32, i32
  }
}

</mosaic_0001>

<bundles_post_ra>
// kernel: tpu_custom_call.1
= control target key start
LH: loop header
LB: loop body
LE: loop exit
PB: predicated region body
PF: predicated region fallthrough
CT: control target
= control target key end

     0   :  { %9 = vsyncpa [#allocation3], 0  ;;  %s809_s0 = inlined_call_operand.hbm [shape: f32[2,8,128], index: 0, kind: input, shape index: {}]   ;;  %s810_s1 = inlined_call_operand.hbm [shape: f32[8,8], index: 1, kind: input, shape index: {}]   ;;  %s811_s2 = inlined_call_operand.vmem [shape: f32[2,1,8,1], index: 2, kind: output, shape index: {0}]   ;;  %s812_s3 = inlined_call_operand.vmem [shape: f32[2,1,8,1], index: 3, kind: output, shape index: {1}]  }
   0x1   :  { %11 = vsyncpa [#allocation3 + $0x1], 0 }
   0x2   :  { %12 = vsyncpa [#allocation5], 0  ;;  %s685_s12 = smov 0   ;;  %s687_s13 = smov 0  }
   0x3   :  { %s689_s14 = smov 0   ;;  %s691_s15 = smov 0  }
   0x4   :  { %s693_s16 = smov 0   ;;  %s695_s17 = smov 0  }
   0x5 LB: > { %s461_s18 = sadd.s32 4294967295, %s659_s17   ;;  %p52_p0 = scmp.ne.s32.totalorder %s643_s13, %s639_s12  ;;  %s659_s17 = sphi %s695_s17, %s18_s17   ;;  %s655_s16 = sphi %s693_s16, %s822_s16   ;;  %s651_s15 = sphi %s691_s15, %s821_s15   ;;  %s647_s14 = sphi %s689_s14, %s820_s14   ;;  %s643_s13 = sphi %s687_s13, %s819_s13   ;;  %s639_s12 = sphi %s685_s12, %s818_s12  }
   0x6   : > { %p715_p1 = scmp.eq.s32.totalorder %s461_s18, 0  ;;  %p463_p2 = scmp.ge.s32.totalorder %s659_s17, 1 }
   0x7   : > { %p140_p3 = scmp.lt.s32.totalorder %s659_s17, 3  ;;  %s661_s22 = smov [#allocation4]  }
   0x8   : > { %p723_p4 = por %p715_p1, %p52_p0  ;;  %s153_s23 = sshll.u32 %s661_s22, 4  ;;  %s154_s23 = int_to_ptr.vmem [resolvable:$true] %s153_s23 }
   0x9   : > { %p727_p5 = pnand %p463_p2, %p140_p3  ;;  %s30_s25 = sadd.s32 1, %s655_s16 }
   0xa   : > { %s39_s26 = sadd.s32 1, %s647_s14  ;;  %p32_p8 = scmp.ge.s32.totalorder %s30_s25, 2 }
   0xb   : > { %p489_p6 = pneg %p727_p5  ;;  %s562_s27 = scalar_lea.vmem %s154_s23, 128 }
   0xc   : > { %p563_p10 = scmp.ne.s32.totalorder %s154_s23, %s562_s27  ;;  %p570_p13 = scmp.lt.s32.totalorder %s154_s23, %s154_s23 }
   0xd   : > { %p735_p7 = pnand %p489_p6, %p715_p1  ;;  %p571_p0 = scmp.lt.s32.totalorder %s562_s27, %s562_s27 }
   0xf   : > { %p553_p9 = pneg %p735_p7  ;;  %p572_p2 = por %p571_p0, %p570_p13 }
  0x11   : > { %p565_p11 = pnand %p563_p10, %p553_p9 }
  0x13   : > { %p566_p12 = pneg %p565_p11 }
  0x15   : > { %p573_p3 = pnand %p572_p2, %p566_p12 }
  0x17   : > { %576 = shalt.err (!%p573_p3)
}
  0x18   : > { %492 = dma.hbm_to_vmem [thread:$0]  (!%p735_p7), %s810_s1, 128, %s154_s23, [#allocation5]  }
  0x19   : > { %s824_s25 = smov (%p32_p8, %s30_s25), 0  ;;  %p46_p6 = scmp.ne.s32.totalorder %s647_s14, %s643_s13 }
  0x1a   : > { %p47_p9 = scmp.eq.s32.totalorder %s659_s17, 0  ;;  %s34_s30 = ssub.s32 %s655_s16, %s824_s25 }
  0x1b   : > { %p498_p10 = scmp.lt.s32.totalorder %s659_s17, 2  ;;  %p37_p11 = scmp.eq.s32.totalorder %s34_s30, 0 }
  0x1c   : > { %p48_p12 = por %p47_p9, %p46_p6  ;;  %s164_s4 = sand.u32 1, %s647_s14  }
  0x1d   : > { %s467_s5 = sshll.u32 %s655_s16, 7  ;;  %s466_s7 = sshll.u32 %s164_s4, 3 }
  0x1e   : > { %s759_s6 = scalar_select %p37_p11, %s647_s14, %s39_s26  }
  0x1f   : > { %s174_s10 = scalar_lea.hbm %s809_s0, %s467_s5  ;;  %s168_s11 = scalar_lea.vmem [#allocation2], %s466_s7 }
  0x20   : > { %s176_s12 = sshll.u32 %s168_s11, 4  ;;  %p764_p7 = pnand %p498_p10, %p48_p12  ;;  %s177_s12 = int_to_ptr.vmem [resolvable:$true] %s176_s12 }
  0x21   : > { %s165_s22 = scalar_lea.sflag [#allocation3], %s164_s4  ;;  %s590_s23 = scalar_lea.vmem %s177_s12, 128 }
  0x22   : > { %p579_p8 = pneg %p764_p7  ;;  %p591_p13 = scmp.ne.s32.totalorder %s177_s12, %s590_s23 }
  0x23   : > { %s662_s24 = smov [#allocation2]  }
  0x24   : > { %p593_p0 = pnand %p591_p13, %p579_p8  ;;  %s595_s26 = sshll.u32 %s662_s24, 4  ;;  %s596_s26 = int_to_ptr.vmem [resolvable:$false] %s595_s26 }
  0x25   : > { %s597_s27 = scalar_lea.vmem %s596_s26, 256  ;;  %p598_p3 = scmp.lt.s32.totalorder %s177_s12, %s596_s26 }
  0x26   : > { %p594_p2 = pneg %p593_p0  ;;  %p599_p6 = scmp.lt.s32.totalorder %s597_s27, %s590_s23 }
  0x28   : > { %p600_p9 = por %p599_p6, %p598_p3 }
  0x2a   : > { %p601_p10 = pnand %p600_p9, %p594_p2 }
  0x2c   : > { %604 = shalt.err (!%p601_p10)
}
  0x2d   : > { %496 = dma.hbm_to_vmem [thread:$0]  (!%p764_p7), %s174_s10, 128, %s177_s12, %s165_s22  }
  0x2e   : > { %185 = sbr.rel (%p727_p5) target bundleno = 394 (0x18a), region = 28  ;;  %s187_s28 = sand.u32 (!%p727_p5), 1, %s643_s13  }
  0x2f   : > { %s469_s29 = sshll.u32 (!%p727_p5), %s187_s28, 3  ;;  %s188_s30 = scalar_lea.sflag (!%p727_p5), [#allocation3], %s187_s28 }
  0x30   : > { %s191_s4 = scalar_lea.vmem (!%p727_p5), [#allocation2], %s469_s29 }
  0x33   : > { %630 = dma.done.wait (%p723_p4), %s188_s30, 128  }
  0x34   : > { %632 = vsyncadd (%p723_p4), %s188_s30, 4294967168 }
  0x35   : > { %634 = dma.done.wait (%p715_p1), [#allocation5], 128  }
  0x36   : > { %636 = vsyncadd (%p715_p1), [#allocation5], 4294967168  ;;  %v663_v0 = vmov 0.0   ;;  %vm664_vm0 = vmmov 0   ;;  %v241_v1 = vld [vmem:[%s191_s4] sm:$0xff]  ;;  %v243_v3 = vld [vmem:[#allocation4] sm:$0xff] }
  0x37   : > { %478 = vmatprep.subr.mxu0 %v663_v0  ;;  %480 = vmatprep.mubr.msk.f32.mxu0 %vm664_vm0, %v663_v0  ;;  %v242_v2 = vmax.f32 %v241_v1, 0.0  ;;  %vm244_vm1 = vcmask 64512   ;;  %p227_p4 = scmp.lt.s32.totalorder %s651_s15, 1  ;;  %vm320_vm2 = vcmask 7168  }
  0x39   : > { %479 = vmatpush3.msra.mxu0 %v242_v2  ;;  %s826_s15 = smov (!%p227_p4, %s651_s15), 1 }
  0x3a   : > { %481 = vmatmul.mubr.msk.f32.vlgmr.msra.gmra.mxu0 %vm244_vm1, %v243_v3  ;;  %s471_s19 = sshll.u32 %s826_s15, 3 }
  0x3b   : > { %s233_s5 = scalar_lea.vmem %s811_s2, %s471_s19  ;;  %s240_s9 = scalar_lea.vmem %s812_s3, %s471_s19 }
  0xfa   : > { %v314_v4 = vpop.f32.mrf.mxu0 }
  0xfb   : > { %318 = vadd.xlane.f32.xlu0 %v314_v4  ;;  %v322_v6 = vmul.f32 %v314_v4, %v314_v4 }
  0xfc   : > { %v482_v5 = vpop.f32.mrf.mxu0 }
  0xff   : > { %323 = vadd.xlane.f32.xlu0 %v322_v6 }
 0x184   : > { %v319_v7 = vpop.xlane.xlu0 %318 }
 0x185   : > { %321 = vst.msk [vmem:[%s233_s5] sm:$0xff] %vm320_vm2, %v319_v7 }
 0x188   : > { %v324_v8 = vpop.xlane.xlu0 %323 }
 0x189   : > { %325 = vst.msk [vmem:[%s240_s9] sm:$0xff] %vm320_vm2, %v324_v8 }
 0x18a PF: > { %s18_s17 = sadd.s32 1, %s659_s17   ;;  %s818_s12 = smov %s643_s13 }
 0x18b   : > { %p15_p1 = scmp.ge.s32.totalorder %s18_s17, 4   ;;  %s819_s13 = smov %s647_s14 }
 0x18c   : > { %s820_s14 = smov %s759_s6  ;;  %s821_s15 = smov %s655_s16 }
 0x18d   : > { %s822_s16 = smov %s824_s25  ;;  %17 = sbr.rel (!%p15_p1) target bundleno = 5 (0x5), region = 84 }
 0x192   :  { %371 = vsyncpa [#allocation3], 1 }
 0x193   :  { %373 = vsyncpa [#allocation3 + $0x1], 1 }
 0x194   :  { %374 = vsyncpa [#allocation5], 1 }

</bundles_post_ra>
